<compile_context>
chip_gen: v7x
topology: tpu7x:2x2x1
jax: 0.10.0
libtpu: 0.0.40
codegen_flags: <defaults>
</compile_context>

<pallas_src>
import functools

import jax
import jax.numpy as jnp
from jax.experimental import pallas as pl
from jax.experimental.pallas import tpu as pltpu

LANE = 128


def _round_up(n, m):
    return ((n + m - 1) // m) * m


def mlp_kernel(x_ref, w1_ref, b1_ref, w2_ref, b2_ref, w3_ref, b3_ref, o_ref):
    # x_ref: (TB, IN) f32 -> cast to bf16 in-kernel (hidden under DMA on the VPU;
    # avoids a separate wrapper-side cast pass over x in HBM).
    x = x_ref[...].astype(jnp.bfloat16)

    # bf16 MXU operands, f32 accumulation; bias-add / ReLU stay f32 (v5e has no
    # bf16 VPU).
    h1 = jnp.dot(x, w1_ref[...], preferred_element_type=jnp.float32) + b1_ref[...]
    h1 = jnp.maximum(h1, 0.0)

    h2 = jnp.dot(h1.astype(jnp.bfloat16), w2_ref[...],
                 preferred_element_type=jnp.float32) + b2_ref[...]
    h2 = jnp.maximum(h2, 0.0)

    out = jnp.dot(h2.astype(jnp.bfloat16), w3_ref[...],
                  preferred_element_type=jnp.float32) + b3_ref[...]
    # Lane-dense (128-wide) bf16 output slab: unmasked vst, half the f32 bytes.
    o_ref[...] = out.astype(o_ref.dtype)


def prepare_params(params):
    """One-time (per param load) prep: pad the head to 128 lanes, cast weights to bf16."""
    w1, b1, w2, b2, w3, b3 = params
    hidden = w1.shape[1]
    action_dim = w3.shape[1]
    out_pad = _round_up(action_dim, LANE)

    w3p = jnp.zeros((hidden, out_pad), w3.dtype).at[:, :action_dim].set(w3)
    b3p = jnp.zeros((1, out_pad), b3.dtype).at[:, :action_dim].set(b3)

    kparams = (
        w1.astype(jnp.bfloat16), b1.astype(jnp.float32),
        w2.astype(jnp.bfloat16), b2.astype(jnp.float32),
        w3p.astype(jnp.bfloat16), b3p.astype(jnp.float32),
    )
    return kparams, action_dim


@functools.partial(jax.jit, static_argnames=("action_dim", "block_batch"))
def rl_model_forward(x, kparams, action_dim, *, block_batch=512):
    """x: (batch, input_dim) f32. Returns (batch, action_dim) f32 logits."""
    w1, b1, w2, b2, w3p, b3p = kparams
    batch, input_dim = x.shape
    hidden = w1.shape[1]
    out_pad = w3p.shape[1]

    # Batch tile: big tiles amortize the ~0.35 us/step grid overhead and per-tile
    # DMA cost. Small batches use a single full-dim tile (block dim == array dim
    # satisfies the (8,128) rule), so no wrapper-side padding is ever needed.
    # Ragged last blocks for large batches are handled by Pallas (out-of-bounds
    # writes are masked; the garbage rows feeding the matmul are row-independent).
    # Note: on v7x, very large single-tile batches would idle one TensorCore;
    # grids of >=2 steps shard via dimension_semantics=("parallel",).
    tb = batch if batch <= block_batch else block_batch
    grid = (pl.cdiv(batch, tb),)

    out = pl.pallas_call(
        mlp_kernel,
        out_shape=jax.ShapeDtypeStruct((batch, out_pad), jnp.bfloat16),
        grid_spec=pltpu.PrefetchScalarGridSpec(
            num_scalar_prefetch=0,
            grid=grid,
            in_specs=[
                # activations: tiled over the batch grid axis, f32 straight from HBM
                pl.BlockSpec((tb, input_dim), lambda i: (i, 0)),
                # weights / biases: constant index_map -> resident in VMEM
                pl.BlockSpec((input_dim, hidden), lambda i: (0, 0)),
                pl.BlockSpec((1, hidden), lambda i: (0, 0)),
                pl.BlockSpec((hidden, hidden), lambda i: (0, 0)),
                pl.BlockSpec((1, hidden), lambda i: (0, 0)),
                pl.BlockSpec((hidden, out_pad), lambda i: (0, 0)),
                pl.BlockSpec((1, out_pad), lambda i: (0, 0)),
            ],
            out_specs=pl.BlockSpec((tb, out_pad), lambda i: (i, 0)),
        ),
        compiler_params=pltpu.CompilerParams(
            dimension_semantics=("parallel",),   # shard batch tiles over v7x's 2 TCs
            vmem_limit_bytes=48 * 1024 * 1024,   # safe ceiling for v7x's 64 MiB VMEM
        ),
    )(x, w1, b1, w2, b2, w3p, b3p)

    # Slice the valid logit lanes; under this jit the slice + f32 cast fuses with
    # any downstream consumer (e.g. argmax for action selection).
    return out[:, :action_dim].astype(jnp.float32)


def init_params(key, input_dim, action_dim, hidden=128):
    # Mimic PyTorch nn.Linear default init: uniform(+/- 1/sqrt(fan_in)).
    # Weights stored as (in_features, out_features) so the kernel does x @ W + b.
    def linear(k, fan_in, fan_out):
        kw, kb = jax.random.split(k)
        bound = 1.0 / jnp.sqrt(fan_in)
        w = jax.random.uniform(kw, (fan_in, fan_out), jnp.float32, -bound, bound)
        b = jax.random.uniform(kb, (1, fan_out), jnp.float32, -bound, bound)
        return w, b

    k1, k2, k3 = jax.random.split(key, 3)
    w1, b1 = linear(k1, input_dim, hidden)
    w2, b2 = linear(k2, hidden, hidden)
    w3, b3 = linear(k3, hidden, action_dim)
    return (w1, b1, w2, b2, w3, b3)


def reference_forward(x, params):
    w1, b1, w2, b2, w3, b3 = params
    h1 = jnp.maximum(x @ w1 + b1, 0.0)
    h2 = jnp.maximum(h1 @ w2 + b2, 0.0)
    return h2 @ w3 + b3


if __name__ == "__main__":
    input_dim = 32
    action_dim = 8
    batch = 200  # not a multiple of 256 -> exercises the full-dim single-tile path

    key = jax.random.PRNGKey(0)
    kx, kp = jax.random.split(key)
    x = jax.random.normal(kx, (batch, input_dim), jnp.float32)
    params = init_params(kp, input_dim, action_dim)

    # One-time param prep (padding + bf16 casts hoisted out of the forward path).
    kparams, adim = prepare_params(params)

    out = jax.block_until_ready(rl_model_forward(x, kparams, adim))
    ref = reference_forward(x, params)

    assert out.shape == (batch, action_dim), out.shape
    # bf16 MXU operands + bf16 output slab -> compare against the f32 reference
    # with a loose tolerance.
    assert jnp.allclose(out, ref, atol=5e-2, rtol=5e-2), "mismatch vs reference"
    print("KERNEL_OK")
</pallas_src>

<mosaic_0001>
module attributes {stable_mosaic.version = 11 : i64} {
  func.func @mlp_kernel(%arg0: i32, %arg1: memref<200x32xf32, #tpu.memory_space<vmem>>, %arg2: memref<32x128xbf16, #tpu.memory_space<vmem>>, %arg3: memref<1x128xf32, #tpu.memory_space<vmem>>, %arg4: memref<128x128xbf16, #tpu.memory_space<vmem>>, %arg5: memref<1x128xf32, #tpu.memory_space<vmem>>, %arg6: memref<128x128xbf16, #tpu.memory_space<vmem>>, %arg7: memref<1x128xf32, #tpu.memory_space<vmem>>, %arg8: memref<200x128xbf16, #tpu.memory_space<vmem>>) attributes {dimension_semantics = [#tpu.dimension_semantics<parallel>], iteration_bounds = array<i64: 1>, scalar_prefetch = 0 : i64, scratch_operands = 0 : i64, tpu.core_type = #tpu.core_type<tc>, window_params = [{transform_indices = @transform_0, window_bounds = array<i64: 200, 32>}, {pipeline_mode = #tpu.pipeline_mode<synchronous>, transform_indices = @transform_1, window_bounds = array<i64: 32, 128>}, {pipeline_mode = #tpu.pipeline_mode<synchronous>, transform_indices = @transform_2, window_bounds = array<i64: 1, 128>}, {pipeline_mode = #tpu.pipeline_mode<synchronous>, transform_indices = @transform_3, window_bounds = array<i64: 128, 128>}, {pipeline_mode = #tpu.pipeline_mode<synchronous>, transform_indices = @transform_4, window_bounds = array<i64: 1, 128>}, {pipeline_mode = #tpu.pipeline_mode<synchronous>, transform_indices = @transform_5, window_bounds = array<i64: 128, 128>}, {pipeline_mode = #tpu.pipeline_mode<synchronous>, transform_indices = @transform_6, window_bounds = array<i64: 1, 128>}, {transform_indices = @transform_7, window_bounds = array<i64: 200, 128>}]} {
    %c0 = arith.constant 0 : index
    %c0_0 = arith.constant 0 : index
    %0 = vector.load %arg1[%c0, %c0_0] : memref<200x32xf32, #tpu.memory_space<vmem>>, vector<200x32xf32>
    %1 = arith.truncf %0 : vector<200x32xf32> to vector<200x32xbf16>
    %c0_1 = arith.constant 0 : index
    %c0_2 = arith.constant 0 : index
    %2 = vector.load %arg2[%c0_1, %c0_2] : memref<32x128xbf16, #tpu.memory_space<vmem>>, vector<32x128xbf16>
    %cst = arith.constant dense<0.000000e+00> : vector<200x128xf32>
    %3 = tpu.matmul %1, %2, %cst {dimension_numbers = #tpu.dot_dimension_numbers<[1], [0], [0], [1], [0, 0, 1, 1], [], []>} : vector<200x32xbf16>, vector<32x128xbf16>, vector<200x128xf32> -> vector<200x128xf32>
    %c0_3 = arith.constant 0 : index
    %c0_4 = arith.constant 0 : index
    %4 = vector.load %arg3[%c0_3, %c0_4] : memref<1x128xf32, #tpu.memory_space<vmem>>, vector<1x128xf32>
    %5 = vector.broadcast %4 : vector<1x128xf32> to vector<200x128xf32>
    %6 = arith.addf %3, %5 : vector<200x128xf32>
    %cst_5 = arith.constant 0.000000e+00 : f32
    %7 = vector.broadcast %cst_5 : f32 to vector<200x128xf32>
    %8 = arith.maximumf %6, %7 : vector<200x128xf32>
    %9 = arith.truncf %8 : vector<200x128xf32> to vector<200x128xbf16>
    %c0_6 = arith.constant 0 : index
    %c0_7 = arith.constant 0 : index
    %10 = vector.load %arg4[%c0_6, %c0_7] : memref<128x128xbf16, #tpu.memory_space<vmem>>, vector<128x128xbf16>
    %cst_8 = arith.constant dense<0.000000e+00> : vector<200x128xf32>
    %11 = tpu.matmul %9, %10, %cst_8 {dimension_numbers = #tpu.dot_dimension_numbers<[1], [0], [0], [1], [0, 0, 1, 1], [], []>} : vector<200x128xbf16>, vector<128x128xbf16>, vector<200x128xf32> -> vector<200x128xf32>
    %c0_9 = arith.constant 0 : index
    %c0_10 = arith.constant 0 : index
    %12 = vector.load %arg5[%c0_9, %c0_10] : memref<1x128xf32, #tpu.memory_space<vmem>>, vector<1x128xf32>
    %13 = vector.broadcast %12 : vector<1x128xf32> to vector<200x128xf32>
    %14 = arith.addf %11, %13 : vector<200x128xf32>
    %cst_11 = arith.constant 0.000000e+00 : f32
    %15 = vector.broadcast %cst_11 : f32 to vector<200x128xf32>
    %16 = arith.maximumf %14, %15 : vector<200x128xf32>
    %17 = arith.truncf %16 : vector<200x128xf32> to vector<200x128xbf16>
    %c0_12 = arith.constant 0 : index
    %c0_13 = arith.constant 0 : index
    %18 = vector.load %arg6[%c0_12, %c0_13] : memref<128x128xbf16, #tpu.memory_space<vmem>>, vector<128x128xbf16>
    %cst_14 = arith.constant dense<0.000000e+00> : vector<200x128xf32>
    %19 = tpu.matmul %17, %18, %cst_14 {dimension_numbers = #tpu.dot_dimension_numbers<[1], [0], [0], [1], [0, 0, 1, 1], [], []>} : vector<200x128xbf16>, vector<128x128xbf16>, vector<200x128xf32> -> vector<200x128xf32>
    %c0_15 = arith.constant 0 : index
    %c0_16 = arith.constant 0 : index
    %20 = vector.load %arg7[%c0_15, %c0_16] : memref<1x128xf32, #tpu.memory_space<vmem>>, vector<1x128xf32>
    %21 = vector.broadcast %20 : vector<1x128xf32> to vector<200x128xf32>
    %22 = arith.addf %19, %21 : vector<200x128xf32>
    %23 = arith.truncf %22 : vector<200x128xf32> to vector<200x128xbf16>
    %c0_17 = arith.constant 0 : index
    %c0_18 = arith.constant 0 : index
    %24 = vector.load %arg8[%c0_17, %c0_18] : memref<200x128xbf16, #tpu.memory_space<vmem>>, vector<200x128xbf16>
    tpu.vector_store %arg8[%c0_17, %c0_18], %23 {strides = array<i32>} : memref<200x128xbf16, #tpu.memory_space<vmem>>, vector<200x128xbf16>,
    return
  }
  func.func @transform_0(%arg0: i32) -> (i32, i32) {
    %c0_i32 = arith.constant 0 : i32
    %c0_i32_0 = arith.constant 0 : i32
    return %arg0, %c0_i32 : i32, i32
  }
  func.func @transform_1(%arg0: i32) -> (i32, i32) {
    %c0_i32 = arith.constant 0 : i32
    %c0_i32_0 = arith.constant 0 : i32
    %c0_i32_1 = arith.constant 0 : i32
    return %c0_i32, %c0_i32_0 : i32, i32
  }
  func.func @transform_2(%arg0: i32) -> (i32, i32) {
    %c0_i32 = arith.constant 0 : i32
    %c0_i32_0 = arith.constant 0 : i32
    %c0_i32_1 = arith.constant 0 : i32
    return %c0_i32, %c0_i32_0 : i32, i32
  }
  func.func @transform_3(%arg0: i32) -> (i32, i32) {
    %c0_i32 = arith.constant 0 : i32
    %c0_i32_0 = arith.constant 0 : i32
    %c0_i32_1 = arith.constant 0 : i32
    return %c0_i32, %c0_i32_0 : i32, i32
  }
  func.func @transform_4(%arg0: i32) -> (i32, i32) {
    %c0_i32 = arith.constant 0 : i32
    %c0_i32_0 = arith.constant 0 : i32
    %c0_i32_1 = arith.constant 0 : i32
    return %c0_i32, %c0_i32_0 : i32, i32
  }
  func.func @transform_5(%arg0: i32) -> (i32, i32) {
    %c0_i32 = arith.constant 0 : i32
    %c0_i32_0 = arith.constant 0 : i32
    %c0_i32_1 = arith.constant 0 : i32
    return %c0_i32, %c0_i32_0 : i32, i32
  }
  func.func @transform_6(%arg0: i32) -> (i32, i32) {
    %c0_i32 = arith.constant 0 : i32
    %c0_i32_0 = arith.constant 0 : i32
    %c0_i32_1 = arith.constant 0 : i32
    return %c0_i32, %c0_i32_0 : i32, i32
  }
  func.func @transform_7(%arg0: i32) -> (i32, i32) {
    %c0_i32 = arith.constant 0 : i32
    %c0_i32_0 = arith.constant 0 : i32
    return %arg0, %c0_i32 : i32, i32
  }
}

</mosaic_0001>

<bundles_post_ra>
// kernel: rl_model_forward.1
= control target key start
LH: loop header
LB: loop body
LE: loop exit
PB: predicated region body
PF: predicated region fallthrough
CT: control target
= control target key end

     0   :  { %v1312_v0 = vmov 0.0   ;;  %vm1313_vm0 = vmmov 0   ;;  %vm88_vm1 = vcmask 261120   ;;  %s1732_s1 = inlined_call_operand.vmem [shape: bf16[32,128], index: 1, kind: input, shape index: {}]   ;;  %s1733_s0 = inlined_call_operand.vmem [shape: f32[200,32], index: 0, kind: input, shape index: {}]   ;;  %s1734_s3 = inlined_call_operand.vmem [shape: bf16[128,128], index: 3, kind: input, shape index: {}]   ;;  %s1735_s5 = inlined_call_operand.vmem [shape: bf16[128,128], index: 5, kind: input, shape index: {}]   ;;  %s1736_s2 = inlined_call_operand.vmem [shape: f32[1,128], index: 2, kind: input, shape index: {}]   ;;  %s1737_s4 = inlined_call_operand.vmem [shape: f32[1,128], index: 4, kind: input, shape index: {}]   ;;  %s1738_s6 = inlined_call_operand.vmem [shape: f32[1,128], index: 6, kind: input, shape index: {}]   ;;  %s1739_s7 = inlined_call_operand.vmem [shape: bf16[200,128], index: 7, kind: output, shape index: {}]  }
   0x1   :  { %1096 = vmatprep.subr.bf16.mxu0 %v1312_v0  ;;  %v1294_v1 = vld [vmem:[%s1732_s1] sm:$0xff]   ;;  %1100 = vmatprep.mubr.msk.bf16.mxu0 %vm1313_vm0, %v1312_v0  ;;  %v1295_v2 = vld [vmem:[%s1732_s1 + $0x8] sm:$0xff]   ;;  %v41_v6 = vld [vmem:[%s1733_s0 + $0x70] sm:$0xff] }
   0x2   :  { %1288 = vmatprep.subr.bf16.mxu1 %v1312_v0  ;;  %1128 = vmatprep.mubr.msk.bf16.mxu1 %vm1313_vm0, %v1312_v0  ;;  %v27_v3 = vld [vmem:[%s1733_s0] sm:$0xff]  ;;  %v28_v4 = vld [vmem:[%s1733_s0 + $0x8] sm:$0xff]  ;;  %v42_v7 = vld [vmem:[%s1733_s0 + $0x78] sm:$0xff] }
   0x3   :  { %1097 = vmatpush3.bf16.msra.mxu0 %v1294_v1  ;;  %1290 = vmatpush3.bf16.msra.mxu1 %v1294_v1  ;;  %v52_v5 = vpack.c.bf16 %v28_v4, %v27_v3  ;;  %v59_v8 = vpack.c.bf16 %v42_v7, %v41_v6  ;;  %v29_v9 = vld [vmem:[%s1733_s0 + $0x10] sm:$0xff]  ;;  %v30_v10 = vld [vmem:[%s1733_s0 + $0x18] sm:$0xff]  ;;  %v43_v11 = vld [vmem:[%s1733_s0 + $0x80] sm:$0xff] }
   0x4   :  { %1098 = vmatprep.subr.bf16.mxu0 %v1312_v0  ;;  %1289 = vmatprep.subr.bf16.mxu1 %v1312_v0  ;;  %v44_v12 = vld [vmem:[%s1733_s0 + $0x88] sm:$0xff]  ;;  %v1296_v13 = vld [vmem:[%s1734_s3] sm:$0xff]   ;;  %v53_v14 = vpack.c.bf16 %v30_v10, %v29_v9  ;;  %v1298_v17 = vld [vmem:[%s1734_s3 + $0x10] sm:$0xff]  }
   0x5   :  { %v1297_v15 = vld [vmem:[%s1734_s3 + $0x8] sm:$0xff]   ;;  %v60_v16 = vpack.c.bf16 %v44_v12, %v43_v11  ;;  %v31_v18 = vld [vmem:[%s1733_s0 + $0x20] sm:$0xff]  ;;  %v45_v20 = vld [vmem:[%s1733_s0 + $0x90] sm:$0xff] }
   0x6   :  { %v32_v19 = vld [vmem:[%s1733_s0 + $0x28] sm:$0xff]  ;;  %v46_v21 = vld [vmem:[%s1733_s0 + $0x98] sm:$0xff]  ;;  %v1300_v25 = vld [vmem:[%s1734_s3 + $0x20] sm:$0xff]  }
   0x7   :  { %1099 = vmatpush3.bf16.msra.mxu0 %v1295_v2  ;;  %1291 = vmatpush3.bf16.msra.mxu1 %v1295_v2  ;;  %v54_v22 = vpack.c.bf16 %v32_v19, %v31_v18  ;;  %v1299_v23 = vld [vmem:[%s1734_s3 + $0x18] sm:$0xff]   ;;  %v61_v24 = vpack.c.bf16 %v46_v21, %v45_v20  ;;  %v33_v26 = vld [vmem:[%s1733_s0 + $0x30] sm:$0xff]  ;;  %v47_v28 = vld [vmem:[%s1733_s0 + $0xa0] sm:$0xff] }
   0x8   :  { %1152 = vmatprep.subr.bf16.mxu1 %v1312_v0  ;;  %1220 = vmatprep.subr.bf16.mxu0 %v1312_v0  ;;  %v34_v27 = vld [vmem:[%s1733_s0 + $0x38] sm:$0xff]  ;;  %v48_v29 = vld [vmem:[%s1733_s0 + $0xa8] sm:$0xff]  ;;  %v1302_v33 = vld [vmem:[%s1734_s3 + $0x30] sm:$0xff]  }
   0x9   :  { %v55_v30 = vpack.c.bf16 %v34_v27, %v33_v26  ;;  %v1301_v31 = vld [vmem:[%s1734_s3 + $0x28] sm:$0xff]   ;;  %v62_v32 = vpack.c.bf16 %v48_v29, %v47_v28  ;;  %v35_v34 = vld [vmem:[%s1733_s0 + $0x40] sm:$0xff]  ;;  %v49_v36 = vld [vmem:[%s1733_s0 + $0xb0] sm:$0xff] }
   0xa   :  { %1101 = vmatmul.mubr.msk.bf16.vlgmr.msra.gmra.mrb[0].mxu0 %vm88_vm1, %v52_v5  ;;  %1129 = vmatmul.mubr.msk.bf16.vlgmr.msra.gmra.mrb[0].mxu1 %vm88_vm1, %v59_v8  ;;  %v36_v35 = vld [vmem:[%s1733_s0 + $0x48] sm:$0xff]  ;;  %v50_v37 = vld [vmem:[%s1733_s0 + $0xb8] sm:$0xff]  ;;  %v37_v40 = vld [vmem:[%s1733_s0 + $0x50] sm:$0xff] }
   0xb   :  { %1104 = vmatprep.mubr.msk.bf16.mxu0 %vm1313_vm0, %v1312_v0  ;;  %1132 = vmatprep.mubr.msk.bf16.mxu1 %vm1313_vm0, %v1312_v0  ;;  %v56_v38 = vpack.c.bf16 %v36_v35, %v35_v34  ;;  %v63_v39 = vpack.c.bf16 %v50_v37, %v49_v36  ;;  %v38_v41 = vld [vmem:[%s1733_s0 + $0x58] sm:$0xff]  ;;  %v51_v42 = vld [vmem:[%s1733_s0 + $0xc0] sm:$0xff]  ;;  %v40_v46 = vld [vmem:[%s1733_s0 + $0x68] sm:$0xff] }
   0xc   :  { %1153 = vmatpush3.bf16.msra.mxu1 %v1296_v13  ;;  %v57_v43 = vpack.c.bf16 %v38_v41, %v37_v40  ;;  %v64_v44 = vpack.c.bf16 %v51_v42, %v51_v42  ;;  %v39_v45 = vld [vmem:[%s1733_s0 + $0x60] sm:$0xff]  ;;  %v1303_v48 = vld [vmem:[%s1734_s3 + $0x38] sm:$0xff]   ;;  %v1305_v50 = vld [vmem:[%s1735_s5 + $0x8] sm:$0xff]  }
   0xd   :  { %1154 = vmatprep.subr.bf16.mxu1 %v1312_v0  ;;  %v58_v47 = vpack.c.bf16 %v40_v46, %v39_v45  ;;  %v1304_v49 = vld [vmem:[%s1735_s5] sm:$0xff]   ;;  %v1306_v51 = vld [vmem:[%s1735_s5 + $0x10] sm:$0xff]   ;;  %v1307_v52 = vld [vmem:[%s1735_s5 + $0x18] sm:$0xff]  }
   0xe   :  { %1221 = vmatpush3.bf16.msra.mxu0 %v1304_v49  ;;  %v1308_v53 = vld [vmem:[%s1735_s5 + $0x20] sm:$0xff]   ;;  %v1309_v54 = vld [vmem:[%s1735_s5 + $0x28] sm:$0xff]   ;;  %v1310_v57 = vld [vmem:[%s1735_s5 + $0x30] sm:$0xff]  }
   0xf   :  { %1222 = vmatprep.subr.bf16.mxu0 %v1312_v0  ;;  %v1541_v55 = vld [vmem:[%s1736_s2] ss:$0 sm:$0xff] }
  0x10   :  { %1155 = vmatpush3.bf16.msra.mxu1 %v1297_v15 }
  0x11   :  { %1156 = vmatprep.subr.bf16.mxu1 %v1312_v0 }
  0x12   :  { %1105 = vmatmul.mubr.msk.bf16.gmra.mrb[4].mxu0 %vm88_vm1, %v53_v14  ;;  %1133 = vmatmul.mubr.msk.bf16.gmra.mrb[4].mxu1 %vm88_vm1, %v60_v16 }
  0x13   :  { %1108 = vmatprep.mubr.msk.bf16.mxu0 %vm1313_vm0, %v1312_v0  ;;  %1136 = vmatprep.mubr.msk.bf16.mxu1 %vm1313_vm0, %v1312_v0 }
  0x14   :  { %1157 = vmatpush3.bf16.msra.mxu1 %v1298_v17  ;;  %1223 = vmatpush3.bf16.msra.mxu0 %v1305_v50 }
  0x15   :  { %1158 = vmatprep.subr.bf16.mxu1 %v1312_v0  ;;  %1224 = vmatprep.subr.bf16.mxu0 %v1312_v0 }
  0x18   :  { %1159 = vmatpush3.bf16.msra.mxu1 %v1299_v23  ;;  %1225 = vmatpush3.bf16.msra.mxu0 %v1306_v51 }
  0x19   :  { %1160 = vmatprep.subr.bf16.mxu1 %v1312_v0  ;;  %1226 = vmatprep.subr.bf16.mxu0 %v1312_v0 }
  0x1a   :  { %1109 = vmatmul.mubr.msk.bf16.gmra.mrb[8].mxu0 %vm88_vm1, %v54_v22  ;;  %1137 = vmatmul.mubr.msk.bf16.gmra.mrb[8].mxu1 %vm88_vm1, %v61_v24 }
  0x1b   :  { %1112 = vmatprep.mubr.msk.bf16.mxu0 %vm1313_vm0, %v1312_v0  ;;  %1140 = vmatprep.mubr.msk.bf16.mxu1 %vm1313_vm0, %v1312_v0 }
  0x1c   :  { %1161 = vmatpush3.bf16.msra.mxu1 %v1300_v25  ;;  %1227 = vmatpush3.bf16.msra.mxu0 %v1307_v52 }
  0x1d   :  { %1162 = vmatprep.subr.bf16.mxu1 %v1312_v0  ;;  %1228 = vmatprep.subr.bf16.mxu0 %v1312_v0 }
  0x20   :  { %1163 = vmatpush3.bf16.msra.mxu1 %v1301_v31  ;;  %1229 = vmatpush3.bf16.msra.mxu0 %v1308_v53 }
  0x21   :  { %1164 = vmatprep.subr.bf16.mxu1 %v1312_v0  ;;  %1230 = vmatprep.subr.bf16.mxu0 %v1312_v0 }
  0x22   :  { %1113 = vmatmul.mubr.msk.bf16.gmra.mrb[12].mxu0 %vm88_vm1, %v55_v30  ;;  %1141 = vmatmul.mubr.msk.bf16.gmra.mrb[12].mxu1 %vm88_vm1, %v62_v32 }
  0x23   :  { %1116 = vmatprep.mubr.msk.bf16.mxu0 %vm1313_vm0, %v1312_v0  ;;  %1144 = vmatprep.mubr.msk.bf16.mxu1 %vm1313_vm0, %v1312_v0 }
  0x24   :  { %1165 = vmatpush3.bf16.msra.mxu1 %v1302_v33  ;;  %1231 = vmatpush3.bf16.msra.mxu0 %v1309_v54 }
  0x25   :  { %1166 = vmatprep.subr.bf16.mxu1 %v1312_v0  ;;  %1232 = vmatprep.subr.bf16.mxu0 %v1312_v0 }
  0x28   :  { %1167 = vmatpush3.bf16.msra.mxu1 %v1303_v48  ;;  %1233 = vmatpush3.bf16.msra.mxu0 %v1310_v57 }
  0x29   :  { %1234 = vmatprep.subr.bf16.mxu0 %v1312_v0 }
  0x2a   :  { %1117 = vmatmul.mubr.msk.bf16.gmra.mrb[16].mxu0 %vm88_vm1, %v56_v38  ;;  %1145 = vmatmul.mubr.msk.bf16.gmra.mrb[16].mxu1 %vm88_vm1, %v63_v39 }
  0x2b   :  { %1120 = vmatprep.mubr.msk.bf16.mxu0 %vm1313_vm0, %v1312_v0  ;;  %1148 = vmatprep.mubr.msk.bf16.mxu1 %vm1313_vm0, %v1312_v0 }
  0x32   :  { %1121 = vmatmul.mubr.msk.bf16.gmra.mrb[20].mxu0 %vm88_vm1, %v57_v43  ;;  %1149 = vmatmul.mubr.msk.bf16.gmra.mrb[20].mxu1 %vm88_vm1, %v64_v44 }
  0x33   :  { %1124 = vmatprep.mubr.msk.bf16.mxu0 %vm1313_vm0, %v1312_v0  ;;  %1168 = vmatprep.mubr.msk.bf16.mxu1 %vm1313_vm0, %v1312_v0 }
  0x3a   :  { %1125 = vmatmul.mubr.msk.bf16.gmra.mrb[24].mxu0 %vm88_vm1, %v58_v47 }
  0x3b   :  { %1236 = vmatprep.mubr.msk.bf16.mxu0 %vm1313_vm0, %v1312_v0 }
  0xdd   :  { %v162_v56 = vpop.f32.mrb[0].mxu0  ;;  %v218_v60 = vpop.f32.mrb[0].mxu1 }
  0xde   :  { %v163_v58 = vadd.f32 %v1541_v55, %v162_v56  ;;  %v1102_v59 = vpop.f32.mrb[1].mxu0  ;;  %v219_v62 = vadd.f32 %v1541_v55, %v218_v60  ;;  %v1130_v63 = vpop.f32.mrb[1].mxu1 }
  0xdf   :  { %v165_v61 = vpop.f32.mrb[2].mxu0  ;;  %v221_v3 = vpop.f32.mrb[2].mxu1 }
  0xe0   :  { %v166_v1 = vadd.f32 %v1541_v55, %v165_v61  ;;  %v1103_v2 = vpop.f32.mrb[3].mxu0  ;;  %v278_v4 = vmax.f32 %v219_v62, 0.0  ;;  %v222_v5 = vadd.f32 %v1541_v55, %v221_v3  ;;  %v1131_v6 = vpop.f32.mrb[3].mxu1  ;;  %v264_v7 = vmax.f32 %v163_v58, 0.0 }
  0xe2   :  { %v265_v8 = vmax.f32 %v166_v1, 0.0  ;;  %v279_v9 = vmax.f32 %v222_v5, 0.0 }
  0xe4   :  { %v289_v10 = vpack.c.bf16 %v265_v8, %v264_v7  ;;  %v1552_v12 = vpack.c.bf16 %v279_v9, %v278_v4 }
  0xe5   :  { %v170_v11 = vpop.f32.mrb[4].mxu0  ;;  %v226_v15 = vpop.f32.mrb[4].mxu1 }
  0xe6   :  { %v171_v13 = vadd.f32 %v1541_v55, %v170_v11  ;;  %v1106_v14 = vpop.f32.mrb[5].mxu0  ;;  %1169 = vmatmul.mubr.bf16.vlgmr.msra.gmra.mrb[24].mxu1 %v289_v10  ;;  %v227_v17 = vadd.f32 %v1541_v55, %v226_v15  ;;  %v1134_v18 = vpop.f32.mrb[5].mxu1 }
  0xe7   :  { %v173_v16 = vpop.f32.mrb[6].mxu0  ;;  %1172 = vmatprep.mubr.msk.bf16.mxu1 %vm1313_vm0, %v1312_v0  ;;  %v229_v21 = vpop.f32.mrb[6].mxu1 }
  0xe8   :  { %v174_v19 = vadd.f32 %v1541_v55, %v173_v16  ;;  %v1107_v20 = vpop.f32.mrb[7].mxu0  ;;  %v280_v22 = vmax.f32 %v227_v17, 0.0  ;;  %v230_v23 = vadd.f32 %v1541_v55, %v229_v21  ;;  %v1135_v24 = vpop.f32.mrb[7].mxu1  ;;  %v266_v25 = vmax.f32 %v171_v13, 0.0 }
  0xea   :  { %v267_v26 = vmax.f32 %v174_v19, 0.0  ;;  %v281_v27 = vmax.f32 %v230_v23, 0.0 }
  0xec   :  { %v290_v28 = vpack.c.bf16 %v267_v26, %v266_v25  ;;  %v1560_v30 = vpack.c.bf16 %v281_v27, %v280_v22 }
  0xed   :  { %v178_v29 = vpop.f32.mrb[8].mxu0  ;;  %v234_v33 = vpop.f32.mrb[8].mxu1 }
  0xee   :  { %v179_v31 = vadd.f32 %v1541_v55, %v178_v29  ;;  %v1110_v32 = vpop.f32.mrb[9].mxu0  ;;  %1173 = vmatmul.mubr.bf16.gmra.mrb[28].mxu1 %v290_v28  ;;  %v235_v35 = vadd.f32 %v1541_v55, %v234_v33  ;;  %v1138_v36 = vpop.f32.mrb[9].mxu1 }
  0xef   :  { %v181_v34 = vpop.f32.mrb[10].mxu0  ;;  %1176 = vmatprep.mubr.msk.bf16.mxu1 %vm1313_vm0, %v1312_v0  ;;  %v237_v39 = vpop.f32.mrb[10].mxu1 }
  0xf0   :  { %v182_v37 = vadd.f32 %v1541_v55, %v181_v34  ;;  %v1111_v38 = vpop.f32.mrb[11].mxu0  ;;  %v282_v40 = vmax.f32 %v235_v35, 0.0  ;;  %v238_v41 = vadd.f32 %v1541_v55, %v237_v39  ;;  %v1139_v42 = vpop.f32.mrb[11].mxu1  ;;  %v268_v43 = vmax.f32 %v179_v31, 0.0 }
  0xf2   :  { %v269_v44 = vmax.f32 %v182_v37, 0.0  ;;  %v283_v45 = vmax.f32 %v238_v41, 0.0 }
  0xf4   :  { %v291_v46 = vpack.c.bf16 %v269_v44, %v268_v43  ;;  %v1568_v48 = vpack.c.bf16 %v283_v45, %v282_v40 }
  0xf5   :  { %v186_v47 = vpop.f32.mrb[12].mxu0  ;;  %v242_v51 = vpop.f32.mrb[12].mxu1 }
  0xf6   :  { %v187_v49 = vadd.f32 %v1541_v55, %v186_v47  ;;  %v1114_v50 = vpop.f32.mrb[13].mxu0  ;;  %1177 = vmatmul.mubr.bf16.gmra.mrb[32].mxu1 %v291_v46  ;;  %v243_v53 = vadd.f32 %v1541_v55, %v242_v51  ;;  %v1142_v54 = vpop.f32.mrb[13].mxu1  ;;  %v1612_v47 = vld [vmem:[%s1737_s4] ss:$0 sm:$0xff] }
  0xf7   :  { %v189_v52 = vpop.f32.mrb[14].mxu0  ;;  %1180 = vmatprep.mubr.msk.bf16.mxu1 %vm1313_vm0, %v1312_v0  ;;  %v245_v58 = vpop.f32.mrb[14].mxu1 }
  0xf8   :  { %v190_v56 = vadd.f32 %v1541_v55, %v189_v52  ;;  %v1115_v57 = vpop.f32.mrb[15].mxu0  ;;  %v284_v59 = vmax.f32 %v243_v53, 0.0  ;;  %v246_v60 = vadd.f32 %v1541_v55, %v245_v58  ;;  %v1143_v61 = vpop.f32.mrb[15].mxu1  ;;  %v270_v62 = vmax.f32 %v187_v49, 0.0 }
  0xfa   :  { %v271_v63 = vmax.f32 %v190_v56, 0.0  ;;  %v285_v1 = vmax.f32 %v246_v60, 0.0 }
  0xfc   :  { %v292_v2 = vpack.c.bf16 %v271_v63, %v270_v62  ;;  %v299_v4 = vpack.c.bf16 %v285_v1, %v284_v59 }
  0xfd   :  { %v194_v3 = vpop.f32.mrb[16].mxu0  ;;  %v250_v7 = vpop.f32.mrb[16].mxu1 }
  0xfe   :  { %v195_v5 = vadd.f32 %v1541_v55, %v194_v3  ;;  %v1118_v6 = vpop.f32.mrb[17].mxu0  ;;  %1181 = vmatmul.mubr.bf16.gmra.mrb[36].mxu1 %v292_v2  ;;  %v251_v9 = vadd.f32 %v1541_v55, %v250_v7  ;;  %v1146_v10 = vpop.f32.mrb[17].mxu1 }
  0xff   :  { %v197_v8 = vpop.f32.mrb[18].mxu0  ;;  %1184 = vmatprep.mubr.msk.bf16.mxu1 %vm1313_vm0, %v1312_v0  ;;  %v253_v14 = vpop.f32.mrb[18].mxu1 }
 0x100   :  { %v198_v11 = vadd.f32 %v1541_v55, %v197_v8  ;;  %v1119_v13 = vpop.f32.mrb[19].mxu0  ;;  %v286_v15 = vmax.f32 %v251_v9, 0.0  ;;  %v254_v16 = vadd.f32 %v1541_v55, %v253_v14  ;;  %v1147_v17 = vpop.f32.mrb[19].mxu1  ;;  %v272_v18 = vmax.f32 %v195_v5, 0.0 }
 0x102   :  { %v273_v19 = vmax.f32 %v198_v11, 0.0  ;;  %v287_v20 = vmax.f32 %v254_v16, 0.0 }
 0x104   :  { %v293_v21 = vpack.c.bf16 %v273_v19, %v272_v18  ;;  %v300_v23 = vpack.c.bf16 %v287_v20, %v286_v15 }
 0x105   :  { %v202_v22 = vpop.f32.mrb[20].mxu0  ;;  %v258_v26 = vpop.f32.mrb[20].mxu1 }
 0x106   :  { %v203_v24 = vadd.f32 %v1541_v55, %v202_v22  ;;  %v1122_v25 = vpop.f32.mrb[21].mxu0  ;;  %1185 = vmatmul.mubr.bf16.gmra.mrb[40].mxu1 %v293_v21  ;;  %v259_v28 = vadd.f32 %v1541_v55, %v258_v26  ;;  %v1150_v29 = vpop.f32.mrb[21].mxu1 }
 0x107   :  { %v205_v27 = vpop.f32.mrb[22].mxu0  ;;  %1188 = vmatprep.mubr.msk.bf16.mxu1 %vm1313_vm0, %v1312_v0  ;;  %v261_v33 = vpop.f32.mrb[22].mxu1 }
 0x108   :  { %v206_v31 = vadd.f32 %v1541_v55, %v205_v27  ;;  %v1123_v32 = vpop.f32.mrb[23].mxu0  ;;  %v1151_v34 = vpop.f32.mrb[23].mxu1  ;;  %v274_v35 = vmax.f32 %v203_v24, 0.0 }
 0x10a   :  { %v275_v36 = vmax.f32 %v206_v31, 0.0 }
 0x10c   :  { %v294_v37 = vpack.c.bf16 %v275_v36, %v274_v35 }
 0x10d   :  { %v210_v38 = vpop.f32.mrb[24].mxu0 }
 0x10e   :  { %v211_v39 = vadd.f32 %v1541_v55, %v210_v38  ;;  %v1126_v40 = vpop.f32.mrb[25].mxu0  ;;  %1189 = vmatmul.mubr.bf16.gmra.mrb[44].mxu1 %v294_v37 }
 0x10f   :  { %v213_v41 = vpop.f32.mrb[26].mxu0  ;;  %1192 = vmatprep.mubr.msk.bf16.mxu1 %vm1313_vm0, %v1312_v0 }
 0x110   :  { %v214_v42 = vadd.f32 %v1541_v55, %v213_v41  ;;  %v1127_v43 = vpop.f32.mrb[27].mxu0  ;;  %v276_v44 = vmax.f32 %v211_v39, 0.0  ;;  %v1311_v55 = vld [vmem:[%s1735_s5 + $0x38] sm:$0xff]  }
 0x111   :  { %1235 = vmatpush3.bf16.msra.mxu0 %v1311_v55 }
 0x112   :  { %v277_v45 = vmax.f32 %v214_v42, 0.0 }
 0x114   :  { %v295_v46 = vpack.c.bf16 %v277_v45, %v276_v44 }
 0x116   :  { %1193 = vmatmul.mubr.bf16.gmra.mrb[48].mxu1 %v295_v46 }
 0x117   :  { %1196 = vmatprep.mubr.msk.bf16.mxu1 %vm1313_vm0, %v1312_v0 }
 0x11e   :  { %1197 = vmatmul.mubr.bf16.gmra.mrb[52].mxu1 %v1552_v12  ;;  %v288_v12 = vmax.f32 %v259_v28, 0.0 }
 0x11f   :  { %1200 = vmatprep.mubr.msk.bf16.mxu1 %vm1313_vm0, %v1312_v0 }
 0x126   :  { %1201 = vmatmul.mubr.bf16.gmra.mrb[56].mxu1 %v1560_v30  ;;  %v301_v30 = vpack.c.bf16 %v288_v12, %v288_v12 }
 0x127   :  { %1204 = vmatprep.mubr.msk.bf16.mxu1 %vm1313_vm0, %v1312_v0 }
 0x12e   :  { %1205 = vmatmul.mubr.bf16.gmra.mrb[60].mxu1 %v1568_v48 }
 0x12f   :  { %1208 = vmatprep.mubr.msk.bf16.mxu1 %vm1313_vm0, %v1312_v0 }
 0x136   :  { %1209 = vmatmul.mubr.bf16.gmra.mrb[64].mxu1 %v299_v4 }
 0x137   :  { %1212 = vmatprep.mubr.msk.bf16.mxu1 %vm1313_vm0, %v1312_v0 }
 0x13e   :  { %1213 = vmatmul.mubr.bf16.gmra.mrb[68].mxu1 %v300_v23 }
 0x13f   :  { %1216 = vmatprep.mubr.msk.bf16.mxu1 %vm1313_vm0, %v1312_v0 }
 0x146   :  { %1217 = vmatmul.mubr.bf16.gmra.mrb[72].mxu1 %v301_v30 }
 0x1b9   :  { %v407_v48 = vpop.f32.mrb[24].mxu1 }
 0x1ba   :  { %v408_v49 = vadd.f32 %v1612_v47, %v407_v48  ;;  %v1170_v50 = vpop.f32.mrb[25].mxu1 }
 0x1bb   :  { %v410_v51 = vpop.f32.mrb[26].mxu1 }
 0x1bc   :  { %v411_v52 = vadd.f32 %v1612_v47, %v410_v51  ;;  %v1171_v53 = vpop.f32.mrb[27].mxu1  ;;  %v509_v54 = vmax.f32 %v408_v49, 0.0 }
 0x1be   :  { %v510_v56 = vmax.f32 %v411_v52, 0.0 }
 0x1c0   :  { %v534_v57 = vpack.c.bf16 %v510_v56, %v509_v54 }
 0x1c1   :  { %v415_v58 = vpop.f32.mrb[28].mxu1 }
 0x1c2   :  { %v416_v59 = vadd.f32 %v1612_v47, %v415_v58  ;;  %v1174_v60 = vpop.f32.mrb[29].mxu1  ;;  %1237 = vmatmul.mubr.bf16.vlgmr.msra.gmra.mrb[28].mxu0 %v534_v57 }
 0x1c3   :  { %v418_v61 = vpop.f32.mrb[30].mxu1  ;;  %1240 = vmatprep.mubr.msk.bf16.mxu0 %vm1313_vm0, %v1312_v0 }
 0x1c4   :  { %v419_v62 = vadd.f32 %v1612_v47, %v418_v61  ;;  %v1175_v63 = vpop.f32.mrb[31].mxu1  ;;  %v511_v1 = vmax.f32 %v416_v59, 0.0 }
 0x1c6   :  { %v512_v2 = vmax.f32 %v419_v62, 0.0 }
 0x1c8   :  { %v535_v3 = vpack.c.bf16 %v512_v2, %v511_v1 }
 0x1c9   :  { %v423_v4 = vpop.f32.mrb[32].mxu1 }
 0x1ca   :  { %v424_v5 = vadd.f32 %v1612_v47, %v423_v4  ;;  %v1178_v6 = vpop.f32.mrb[33].mxu1  ;;  %1241 = vmatmul.mubr.bf16.gmra.mrb[32].mxu0 %v535_v3 }
 0x1cb   :  { %v426_v7 = vpop.f32.mrb[34].mxu1  ;;  %1244 = vmatprep.mubr.msk.bf16.mxu0 %vm1313_vm0, %v1312_v0 }
 0x1cc   :  { %v427_v8 = vadd.f32 %v1612_v47, %v426_v7  ;;  %v1179_v9 = vpop.f32.mrb[35].mxu1  ;;  %v513_v10 = vmax.f32 %v424_v5, 0.0 }
 0x1ce   :  { %v514_v11 = vmax.f32 %v427_v8, 0.0 }
 0x1d0   :  { %v536_v13 = vpack.c.bf16 %v514_v11, %v513_v10 }
 0x1d1   :  { %v431_v14 = vpop.f32.mrb[36].mxu1 }
 0x1d2   :  { %v432_v15 = vadd.f32 %v1612_v47, %v431_v14  ;;  %v1182_v16 = vpop.f32.mrb[37].mxu1  ;;  %1245 = vmatmul.mubr.bf16.gmra.mrb[36].mxu0 %v536_v13 }
 0x1d3   :  { %v434_v17 = vpop.f32.mrb[38].mxu1  ;;  %1248 = vmatprep.mubr.msk.bf16.mxu0 %vm1313_vm0, %v1312_v0 }
 0x1d4   :  { %v435_v18 = vadd.f32 %v1612_v47, %v434_v17  ;;  %v1183_v19 = vpop.f32.mrb[39].mxu1  ;;  %v515_v20 = vmax.f32 %v432_v15, 0.0 }
 0x1d6   :  { %v516_v21 = vmax.f32 %v435_v18, 0.0 }
 0x1d8   :  { %v537_v22 = vpack.c.bf16 %v516_v21, %v515_v20 }
 0x1d9   :  { %v439_v23 = vpop.f32.mrb[40].mxu1 }
 0x1da   :  { %v440_v24 = vadd.f32 %v1612_v47, %v439_v23  ;;  %v1186_v25 = vpop.f32.mrb[41].mxu1  ;;  %1249 = vmatmul.mubr.bf16.gmra.mrb[40].mxu0 %v537_v22 }
 0x1db   :  { %v442_v26 = vpop.f32.mrb[42].mxu1  ;;  %1252 = vmatprep.mubr.msk.bf16.mxu0 %vm1313_vm0, %v1312_v0 }
 0x1dc   :  { %v443_v27 = vadd.f32 %v1612_v47, %v442_v26  ;;  %v1187_v28 = vpop.f32.mrb[43].mxu1  ;;  %v517_v29 = vmax.f32 %v440_v24, 0.0 }
 0x1de   :  { %v518_v31 = vmax.f32 %v443_v27, 0.0 }
 0x1e0   :  { %v538_v32 = vpack.c.bf16 %v518_v31, %v517_v29 }
 0x1e1   :  { %v447_v33 = vpop.f32.mrb[44].mxu1 }
 0x1e2   :  { %v448_v34 = vadd.f32 %v1612_v47, %v447_v33  ;;  %v1190_v35 = vpop.f32.mrb[45].mxu1  ;;  %1253 = vmatmul.mubr.bf16.gmra.mrb[44].mxu0 %v538_v32 }
 0x1e3   :  { %v450_v36 = vpop.f32.mrb[46].mxu1  ;;  %1256 = vmatprep.mubr.msk.bf16.mxu0 %vm1313_vm0, %v1312_v0 }
 0x1e4   :  { %v451_v37 = vadd.f32 %v1612_v47, %v450_v36  ;;  %v1191_v38 = vpop.f32.mrb[47].mxu1  ;;  %v519_v39 = vmax.f32 %v448_v34, 0.0 }
 0x1e6   :  { %v520_v40 = vmax.f32 %v451_v37, 0.0 }
 0x1e8   :  { %v539_v41 = vpack.c.bf16 %v520_v40, %v519_v39 }
 0x1e9   :  { %v455_v42 = vpop.f32.mrb[48].mxu1 }
 0x1ea   :  { %v456_v43 = vadd.f32 %v1612_v47, %v455_v42  ;;  %v1194_v44 = vpop.f32.mrb[49].mxu1  ;;  %1257 = vmatmul.mubr.bf16.gmra.mrb[48].mxu0 %v539_v41  ;;  %v1666_v41 = vld [vmem:[%s1738_s6] ss:$0 sm:$0xff] }
 0x1eb   :  { %v458_v45 = vpop.f32.mrb[50].mxu1  ;;  %1260 = vmatprep.mubr.msk.bf16.mxu0 %vm1313_vm0, %v1312_v0 }
 0x1ec   :  { %v459_v46 = vadd.f32 %v1612_v47, %v458_v45  ;;  %v1195_v55 = vpop.f32.mrb[51].mxu1  ;;  %v521_v12 = vmax.f32 %v456_v43, 0.0 }
 0x1ee   :  { %v522_v30 = vmax.f32 %v459_v46, 0.0 }
 0x1f0   :  { %v540_v48 = vpack.c.bf16 %v522_v30, %v521_v12 }
 0x1f1   :  { %v463_v49 = vpop.f32.mrb[52].mxu1 }
 0x1f2   :  { %v464_v50 = vadd.f32 %v1612_v47, %v463_v49  ;;  %v1198_v51 = vpop.f32.mrb[53].mxu1  ;;  %1261 = vmatmul.mubr.bf16.gmra.mrb[52].mxu0 %v540_v48 }
 0x1f3   :  { %v466_v52 = vpop.f32.mrb[54].mxu1  ;;  %1264 = vmatprep.mubr.msk.bf16.mxu0 %vm1313_vm0, %v1312_v0 }
 0x1f4   :  { %v467_v53 = vadd.f32 %v1612_v47, %v466_v52  ;;  %v1199_v54 = vpop.f32.mrb[55].mxu1  ;;  %v523_v56 = vmax.f32 %v464_v50, 0.0 }
 0x1f6   :  { %v524_v57 = vmax.f32 %v467_v53, 0.0 }
 0x1f8   :  { %v541_v58 = vpack.c.bf16 %v524_v57, %v523_v56 }
 0x1f9   :  { %v471_v59 = vpop.f32.mrb[56].mxu1 }
 0x1fa   :  { %v472_v60 = vadd.f32 %v1612_v47, %v471_v59  ;;  %v1202_v61 = vpop.f32.mrb[57].mxu1  ;;  %1265 = vmatmul.mubr.bf16.gmra.mrb[56].mxu0 %v541_v58 }
 0x1fb   :  { %v474_v62 = vpop.f32.mrb[58].mxu1  ;;  %1268 = vmatprep.mubr.msk.bf16.mxu0 %vm1313_vm0, %v1312_v0 }
 0x1fc   :  { %v475_v63 = vadd.f32 %v1612_v47, %v474_v62  ;;  %v1203_v1 = vpop.f32.mrb[59].mxu1  ;;  %v525_v2 = vmax.f32 %v472_v60, 0.0 }
 0x1fe   :  { %v526_v3 = vmax.f32 %v475_v63, 0.0 }
 0x200   :  { %v542_v4 = vpack.c.bf16 %v526_v3, %v525_v2 }
 0x201   :  { %v479_v5 = vpop.f32.mrb[60].mxu1 }
 0x202   :  { %v480_v6 = vadd.f32 %v1612_v47, %v479_v5  ;;  %v1206_v7 = vpop.f32.mrb[61].mxu1  ;;  %1269 = vmatmul.mubr.bf16.gmra.mrb[60].mxu0 %v542_v4 }
 0x203   :  { %v482_v8 = vpop.f32.mrb[62].mxu1  ;;  %1272 = vmatprep.mubr.msk.bf16.mxu0 %vm1313_vm0, %v1312_v0 }
 0x204   :  { %v483_v9 = vadd.f32 %v1612_v47, %v482_v8  ;;  %v1207_v10 = vpop.f32.mrb[63].mxu1  ;;  %v527_v11 = vmax.f32 %v480_v6, 0.0 }
 0x206   :  { %v528_v13 = vmax.f32 %v483_v9, 0.0 }
 0x208   :  { %v543_v14 = vpack.c.bf16 %v528_v13, %v527_v11 }
 0x209   :  { %v487_v15 = vpop.f32.mrb[64].mxu1 }
 0x20a   :  { %v488_v16 = vadd.f32 %v1612_v47, %v487_v15  ;;  %v1210_v17 = vpop.f32.mrb[65].mxu1  ;;  %1273 = vmatmul.mubr.bf16.gmra.mrb[64].mxu0 %v543_v14 }
 0x20b   :  { %v490_v18 = vpop.f32.mrb[66].mxu1  ;;  %1276 = vmatprep.mubr.msk.bf16.mxu0 %vm1313_vm0, %v1312_v0 }
 0x20c   :  { %v491_v19 = vadd.f32 %v1612_v47, %v490_v18  ;;  %v1211_v20 = vpop.f32.mrb[67].mxu1  ;;  %v529_v21 = vmax.f32 %v488_v16, 0.0 }
 0x20e   :  { %v530_v22 = vmax.f32 %v491_v19, 0.0 }
 0x210   :  { %v544_v23 = vpack.c.bf16 %v530_v22, %v529_v21 }
 0x211   :  { %v495_v24 = vpop.f32.mrb[68].mxu1 }
 0x212   :  { %v496_v25 = vadd.f32 %v1612_v47, %v495_v24  ;;  %v1214_v26 = vpop.f32.mrb[69].mxu1  ;;  %1277 = vmatmul.mubr.bf16.gmra.mrb[68].mxu0 %v544_v23 }
 0x213   :  { %v498_v27 = vpop.f32.mrb[70].mxu1  ;;  %1280 = vmatprep.mubr.msk.bf16.mxu0 %vm1313_vm0, %v1312_v0 }
 0x214   :  { %v499_v28 = vadd.f32 %v1612_v47, %v498_v27  ;;  %v1215_v29 = vpop.f32.mrb[71].mxu1  ;;  %v531_v31 = vmax.f32 %v496_v25, 0.0 }
 0x216   :  { %v532_v32 = vmax.f32 %v499_v28, 0.0 }
 0x218   :  { %v545_v33 = vpack.c.bf16 %v532_v32, %v531_v31 }
 0x219   :  { %v503_v34 = vpop.f32.mrb[72].mxu1 }
 0x21a   :  { %v504_v35 = vadd.f32 %v1612_v47, %v503_v34  ;;  %v1218_v36 = vpop.f32.mrb[73].mxu1  ;;  %1281 = vmatmul.mubr.bf16.gmra.mrb[72].mxu0 %v545_v33 }
 0x21b   :  { %v506_v37 = vpop.f32.mrb[74].mxu1  ;;  %1284 = vmatprep.mubr.msk.bf16.mxu0 %vm1313_vm0, %v1312_v0 }
 0x21c   :  { %v533_v38 = vmax.f32 %v504_v35, 0.0  ;;  %v1219_v39 = vpop.f32.mrb[75].mxu1 }
 0x21e   :  { %v546_v40 = vpack.c.bf16 %v533_v38, %v533_v38 }
 0x222   :  { %1285 = vmatmul.mubr.bf16.gmra.mrb[76].mxu0 %v546_v40 }
 0x295   :  { %v652_v42 = vpop.f32.mrb[28].mxu0 }
 0x296   :  { %v1238_v43 = vpop.f32.mrb[29].mxu0  ;;  %v653_v47 = vadd.f32 %v1666_v41, %v652_v42 }
 0x297   :  { %v655_v44 = vpop.f32.mrb[30].mxu0 }
 0x298   :  { %v656_v45 = vadd.f32 %v1666_v41, %v655_v44  ;;  %v1239_v46 = vpop.f32.mrb[31].mxu0 }
 0x29a   :  { %v971_v55 = vpack.c.bf16 %v656_v45, %v653_v47 }
 0x29c   :  { %972 = vst [vmem:[%s1739_s7] sm:$0xff] %v971_v55  }
 0x29d   :  { %v660_v0 = vpop.f32.mrb[32].mxu0 }
 0x29e   :  { %v1242_v12 = vpop.f32.mrb[33].mxu0  ;;  %v661_v48 = vadd.f32 %v1666_v41, %v660_v0 }
 0x29f   :  { %v663_v30 = vpop.f32.mrb[34].mxu0 }
 0x2a0   :  { %v664_v49 = vadd.f32 %v1666_v41, %v663_v30  ;;  %v1243_v50 = vpop.f32.mrb[35].mxu0 }
 0x2a2   :  { %v976_v51 = vpack.c.bf16 %v664_v49, %v661_v48 }
 0x2a4   :  { %1028 = vst [vmem:[%s1739_s7 + $0x8] sm:$0xff] %v976_v51  }
 0x2a5   :  { %v668_v52 = vpop.f32.mrb[36].mxu0 }
 0x2a6   :  { %v1246_v53 = vpop.f32.mrb[37].mxu0  ;;  %v669_v56 = vadd.f32 %v1666_v41, %v668_v52 }
 0x2a7   :  { %v671_v54 = vpop.f32.mrb[38].mxu0 }
 0x2a8   :  { %v672_v57 = vadd.f32 %v1666_v41, %v671_v54  ;;  %v1247_v58 = vpop.f32.mrb[39].mxu0 }
 0x2aa   :  { %v981_v59 = vpack.c.bf16 %v672_v57, %v669_v56 }
 0x2ac   :  { %1029 = vst [vmem:[%s1739_s7 + $0x10] sm:$0xff] %v981_v59  }
 0x2ad   :  { %v676_v60 = vpop.f32.mrb[40].mxu0 }
 0x2ae   :  { %v1250_v61 = vpop.f32.mrb[41].mxu0  ;;  %v677_v63 = vadd.f32 %v1666_v41, %v676_v60 }
 0x2af   :  { %v679_v62 = vpop.f32.mrb[42].mxu0 }
 0x2b0   :  { %v680_v1 = vadd.f32 %v1666_v41, %v679_v62  ;;  %v1251_v2 = vpop.f32.mrb[43].mxu0 }
 0x2b2   :  { %v986_v3 = vpack.c.bf16 %v680_v1, %v677_v63 }
 0x2b4   :  { %1030 = vst [vmem:[%s1739_s7 + $0x18] sm:$0xff] %v986_v3  }
 0x2b5   :  { %v684_v4 = vpop.f32.mrb[44].mxu0 }
 0x2b6   :  { %v1254_v5 = vpop.f32.mrb[45].mxu0  ;;  %v685_v7 = vadd.f32 %v1666_v41, %v684_v4 }
 0x2b7   :  { %v687_v6 = vpop.f32.mrb[46].mxu0 }
 0x2b8   :  { %v688_v8 = vadd.f32 %v1666_v41, %v687_v6  ;;  %v1255_v9 = vpop.f32.mrb[47].mxu0 }
 0x2ba   :  { %v991_v10 = vpack.c.bf16 %v688_v8, %v685_v7 }
 0x2bc   :  { %1031 = vst [vmem:[%s1739_s7 + $0x20] sm:$0xff] %v991_v10  }
 0x2bd   :  { %v692_v11 = vpop.f32.mrb[48].mxu0 }
 0x2be   :  { %v1258_v13 = vpop.f32.mrb[49].mxu0  ;;  %v693_v15 = vadd.f32 %v1666_v41, %v692_v11 }
 0x2bf   :  { %v695_v14 = vpop.f32.mrb[50].mxu0 }
 0x2c0   :  { %v696_v16 = vadd.f32 %v1666_v41, %v695_v14  ;;  %v1259_v17 = vpop.f32.mrb[51].mxu0 }
 0x2c2   :  { %v996_v18 = vpack.c.bf16 %v696_v16, %v693_v15 }
 0x2c4   :  { %1032 = vst [vmem:[%s1739_s7 + $0x28] sm:$0xff] %v996_v18  }
 0x2c5   :  { %v700_v19 = vpop.f32.mrb[52].mxu0 }
 0x2c6   :  { %v1262_v20 = vpop.f32.mrb[53].mxu0  ;;  %v701_v22 = vadd.f32 %v1666_v41, %v700_v19 }
 0x2c7   :  { %v703_v21 = vpop.f32.mrb[54].mxu0 }
 0x2c8   :  { %v704_v23 = vadd.f32 %v1666_v41, %v703_v21  ;;  %v1263_v24 = vpop.f32.mrb[55].mxu0 }
 0x2ca   :  { %v1001_v25 = vpack.c.bf16 %v704_v23, %v701_v22 }
 0x2cc   :  { %1033 = vst [vmem:[%s1739_s7 + $0x30] sm:$0xff] %v1001_v25  }
 0x2cd   :  { %v708_v26 = vpop.f32.mrb[56].mxu0 }
 0x2ce   :  { %v1266_v27 = vpop.f32.mrb[57].mxu0  ;;  %v709_v29 = vadd.f32 %v1666_v41, %v708_v26 }
 0x2cf   :  { %v711_v28 = vpop.f32.mrb[58].mxu0 }
 0x2d0   :  { %v712_v31 = vadd.f32 %v1666_v41, %v711_v28  ;;  %v1267_v32 = vpop.f32.mrb[59].mxu0 }
 0x2d2   :  { %v1006_v33 = vpack.c.bf16 %v712_v31, %v709_v29 }
 0x2d4   :  { %1034 = vst [vmem:[%s1739_s7 + $0x38] sm:$0xff] %v1006_v33  }
 0x2d5   :  { %v716_v34 = vpop.f32.mrb[60].mxu0 }
 0x2d6   :  { %v1270_v35 = vpop.f32.mrb[61].mxu0  ;;  %v717_v37 = vadd.f32 %v1666_v41, %v716_v34 }
 0x2d7   :  { %v719_v36 = vpop.f32.mrb[62].mxu0 }
 0x2d8   :  { %v720_v38 = vadd.f32 %v1666_v41, %v719_v36  ;;  %v1271_v39 = vpop.f32.mrb[63].mxu0 }
 0x2da   :  { %v1011_v40 = vpack.c.bf16 %v720_v38, %v717_v37 }
 0x2dc   :  { %1035 = vst [vmem:[%s1739_s7 + $0x40] sm:$0xff] %v1011_v40  }
 0x2dd   :  { %v724_v42 = vpop.f32.mrb[64].mxu0 }
 0x2de   :  { %v1274_v43 = vpop.f32.mrb[65].mxu0  ;;  %v725_v47 = vadd.f32 %v1666_v41, %v724_v42 }
 0x2df   :  { %v727_v44 = vpop.f32.mrb[66].mxu0 }
 0x2e0   :  { %v728_v45 = vadd.f32 %v1666_v41, %v727_v44  ;;  %v1275_v46 = vpop.f32.mrb[67].mxu0 }
 0x2e2   :  { %v1016_v55 = vpack.c.bf16 %v728_v45, %v725_v47 }
 0x2e4   :  { %1036 = vst [vmem:[%s1739_s7 + $0x48] sm:$0xff] %v1016_v55  }
 0x2e5   :  { %v732_v0 = vpop.f32.mrb[68].mxu0 }
 0x2e6   :  { %v1278_v12 = vpop.f32.mrb[69].mxu0  ;;  %v733_v48 = vadd.f32 %v1666_v41, %v732_v0 }
 0x2e7   :  { %v735_v30 = vpop.f32.mrb[70].mxu0 }
 0x2e8   :  { %v736_v49 = vadd.f32 %v1666_v41, %v735_v30  ;;  %v1279_v50 = vpop.f32.mrb[71].mxu0 }
 0x2ea   :  { %v1021_v51 = vpack.c.bf16 %v736_v49, %v733_v48 }
 0x2ec   :  { %1037 = vst [vmem:[%s1739_s7 + $0x50] sm:$0xff] %v1021_v51  }
 0x2ed   :  { %v740_v52 = vpop.f32.mrb[72].mxu0 }
 0x2ee   :  { %v1282_v53 = vpop.f32.mrb[73].mxu0  ;;  %v741_v56 = vadd.f32 %v1666_v41, %v740_v52 }
 0x2ef   :  { %v743_v54 = vpop.f32.mrb[74].mxu0 }
 0x2f0   :  { %v744_v57 = vadd.f32 %v1666_v41, %v743_v54  ;;  %v1283_v58 = vpop.f32.mrb[75].mxu0 }
 0x2f2   :  { %v1026_v59 = vpack.c.bf16 %v744_v57, %v741_v56 }
 0x2f4   :  { %1038 = vst [vmem:[%s1739_s7 + $0x58] sm:$0xff] %v1026_v59  }
 0x2f5   :  { %v748_v60 = vpop.f32.mrb[76].mxu0 }
 0x2f6   :  { %v749_v61 = vadd.f32 %v1666_v41, %v748_v60  ;;  %v1286_v62 = vpop.f32.mrb[77].mxu0 }
 0x2f7   :  { %v751_v63 = vpop.f32.mrb[78].mxu0 }
 0x2f8   :  { %v967_v1 = vpack.c.bf16 %v749_v61, %v749_v61  ;;  %v1287_v2 = vpop.f32.mrb[79].mxu0 }
 0x2fa   :  { %879 = vst [vmem:[%s1739_s7 + $0x60] sm:$0xf] %v967_v1 }

</bundles_post_ra>
